<compile_context>
chip_gen: v6e
topology: v6e:2x2x1
jax: 0.10.0
libtpu: 0.0.40
codegen_flags: <defaults>
</compile_context>

<pallas_src>
import functools

import jax
import jax.numpy as jnp
import numpy as np
from jax.experimental import pallas as pl
from jax.experimental.pallas import tpu as pltpu


def _round_up(v, m):
    return ((v + m - 1) // m) * m


# ----------------------------------------------------------------------------
# Pallas kernel: the full GraphNeuralKernel (all layers), everything in VMEM.
# ----------------------------------------------------------------------------
def _gnk_kernel(n_layers, f_aug, width, compute_dtype,
                xT_ref, eaT_ref, gatherT_ref, aggT_ref, invdeg_ref,
                wdr_ref, wn_ref, bn_ref, out_ref, z_ref):
    xT = xT_ref[...]                    # (W, N_pad)     compute dtype
    eaT = eaT_ref[...]                  # (F+1, E_pad)   compute dtype, lane axis = E
    gatherT = gatherT_ref[...]          # (N_pad, E_pad) 0/1
    aggT = aggT_ref[...]                # (E_pad, N_pad) 0/1 (sum aggregation)
    inv_deg = invdeg_ref[...]           # (1, N_pad)     f32 reciprocal degree

    out_f32 = None
    # Static unrolled loop over the (unshared-weight) GNO layers.
    for l in range(n_layers):
        # Gather source-node features as one MXU matmul; lane axis = E_pad.
        xsrcT = jnp.dot(xT, gatherT,
                        preferred_element_type=jnp.float32)             # (W, E_pad) f32

        # Z^T[(f*W + j), e] = ea_aug[e, f] * xsrc[e, j]; static slice-stores
        # into a persistent VMEM scratch (VPU work, overlaps with MXU).
        for f in range(f_aug):
            z_ref[pl.ds(f * width, width), :] = (
                eaT[f:f + 1, :].astype(jnp.float32) * xsrcT
            ).astype(compute_dtype)

        # Per-edge dense kernel as ONE K=(F+1)*W contraction.
        # TODO(synk): on v5e (128-deep MXU) K=(F+1)*W=160 spans a second,
        # quarter-full K pass; split/pad the contraction if v5e throughput matters.
        msgsT = jnp.dot(wdr_ref[l], z_ref[...],
                        preferred_element_type=jnp.float32)             # (W, E_pad) f32

        # Sum aggregation over incoming edges (exact 0/1 matmul, K = E_pad),
        # then exact mean via a reciprocal-degree VPU scale.
        aggrT = jnp.dot(msgsT.astype(compute_dtype), aggT,
                        preferred_element_type=jnp.float32) * inv_deg   # (W, N_pad) f32

        # Node-wise linear + bias + external tanh (EUP).
        nodeT = jnp.dot(wn_ref[l], xT,
                        preferred_element_type=jnp.float32) + bn_ref[l]  # (W, N_pad)
        out_f32 = jnp.tanh(aggrT + nodeT)
        xT = out_f32.astype(compute_dtype)

    out_ref[...] = out_f32


# ----------------------------------------------------------------------------
# One-time parameter init & re-layout (hoisted out of the forward path).
# ----------------------------------------------------------------------------
def init_graph_neural_kernel(key, width, edge_features, n_layers=2):
    """Deterministic parameter init.  internal_n_layers=0 -> dense kernel net
    is a single Linear(edge_features, width*width)."""
    layers = []
    for _ in range(n_layers):
        key, k1, k2, k3, k4 = jax.random.split(key, 5)
        wd = 0.1 * jax.random.normal(k1, (edge_features, width * width), jnp.float32)
        bd = 0.1 * jax.random.normal(k2, (width * width,), jnp.float32)
        wn = 0.1 * jax.random.normal(k3, (width, width), jnp.float32)
        bn = 0.1 * jax.random.normal(k4, (width,), jnp.float32)
        layers.append((wd, bd, wn, bn))
    return layers


def prepare_gnk_params(layer_params, width, edge_features, dtype=jnp.bfloat16):
    """One-time weight re-layout (concat bias, reshape/transpose, stack) so no
    transpose/reshape ops run around the kernel on every forward call."""
    f_aug = edge_features + 1
    wdr_list, wn_list, bn_list = [], [], []
    for (wd, bd, wn, bn) in layer_params:
        wd_aug = jnp.concatenate([wd, bd[None, :]], axis=0)                # (F+1, W*W)
        # wdrT[i, f*W + j] = wd_aug[f, i*W + j]
        wdrT = (wd_aug.reshape(f_aug, width, width)
                      .transpose(1, 0, 2)
                      .reshape(width, f_aug * width))
        wdr_list.append(wdrT)
        wn_list.append(wn.T)                                               # (W, W)
        bn_list.append(bn.reshape(width, 1))                               # (W, 1)
    wdr_all = jnp.stack(wdr_list).astype(dtype)                            # (L, W, (F+1)W)
    wn_all = jnp.stack(wn_list).astype(dtype)                              # (L, W, W)
    bn_all = jnp.stack(bn_list).astype(jnp.float32)                        # (L, W, 1)
    return wdr_all, wn_all, bn_all


def prepare_graph(edge_index, edge_attr, n_nodes, dtype=jnp.bfloat16):
    """Per-graph glue, built ONCE per graph and reused across layers / forwards.
    gatherT built directly transposed via an iota comparison (no one_hot().T),
    aggT is a pure 0/1 sum-aggregation one-hot, mean applied via inv_deg."""
    n_edges = edge_attr.shape[0]
    f_aug = edge_attr.shape[1] + 1
    n_pad = _round_up(max(n_nodes, 8), 128)
    e_pad = _round_up(max(n_edges, 8), 128)

    src, dst = edge_index[0], edge_index[1]
    node_ids = jnp.arange(n_pad, dtype=src.dtype)
    # Padded edges get src/dst = -1 so their one-hot columns/rows are all zero.
    src_p = jnp.full((e_pad,), -1, src.dtype).at[:n_edges].set(src)
    dst_p = jnp.full((e_pad,), -1, dst.dtype).at[:n_edges].set(dst)

    gatherT = (src_p[None, :] == node_ids[:, None]).astype(dtype)          # (N_pad, E_pad)
    agg_mask = (dst_p[:, None] == node_ids[None, :])
    aggT = agg_mask.astype(dtype)                                          # (E_pad, N_pad)
    deg = jnp.sum(agg_mask.astype(jnp.float32), axis=0)                    # (N_pad,)
    inv_deg = (1.0 / jnp.maximum(deg, 1.0)).reshape(1, n_pad)              # (1, N_pad) f32

    ea_aug = jnp.concatenate(
        [edge_attr.astype(jnp.float32), jnp.ones((n_edges, 1), jnp.float32)], axis=1)
    eaT = (jnp.zeros((f_aug, e_pad), jnp.float32)
              .at[:, :n_edges].set(ea_aug.T)
              .astype(dtype))                                              # (F+1, E_pad)
    return eaT, gatherT, aggT, inv_deg


# ----------------------------------------------------------------------------
# Forward pass: ONE pallas_call, fully VMEM-resident.
# ----------------------------------------------------------------------------
@jax.jit
def graph_neural_kernel_pallas(x, graph, params):
    """Forward pass of GraphNeuralKernel (unshared weights) as ONE pallas_call.

    TODO(synk): for large graphs (N_pad*E_pad f32/bf16 no longer VMEM-resident,
    e.g. v7x's 64 MiB) replace the dense one-hot gather/agg matmuls with an
    edge-tiled PrefetchScalarGridSpec grid (src/dst prefetched to SMEM, per-tile
    gather via index_map, segment accumulation into a persistent (W, N_tile)
    VMEM accumulator with pl.when init/finalize over an 'arbitrary' edge axis)
    and add a 'parallel' partition axis so both v7x TensorCores are used.  At
    this toy size (W=32, N=32, E=128) the single-shot fused form is
    latency-optimal (per-grid-step overhead ~0.35 us would dominate).
    """
    eaT, gatherT, aggT, inv_deg = graph
    wdr_all, wn_all, bn_all = params

    n_nodes, width = x.shape
    n_pad, e_pad = gatherT.shape
    f_aug = eaT.shape[0]
    n_layers = wdr_all.shape[0]
    compute_dtype = wdr_all.dtype

    # Zero-padded, transposed, lane-dense node features.
    xT = (jnp.zeros((width, n_pad), compute_dtype)
             .at[:, :n_nodes].set(x.T.astype(compute_dtype)))

    # --- VMEM budget computed from actual resident buffers (gridless, no
    #     double-buffering), instead of a hard-coded limit. ---------------------
    comp_bytes = jnp.dtype(compute_dtype).itemsize
    resident_bytes = (
        width * n_pad * comp_bytes                       # xT
        + f_aug * e_pad * comp_bytes                     # eaT
        + n_pad * e_pad * comp_bytes                     # gatherT
        + e_pad * n_pad * comp_bytes                     # aggT
        + n_pad * 4                                      # inv_deg
        + n_layers * width * f_aug * width * comp_bytes  # wdr
        + n_layers * width * width * comp_bytes          # wn
        + n_layers * width * 4                           # bn
        + width * n_pad * 4                              # output
        + f_aug * width * e_pad * comp_bytes)            # z scratch
    vmem_limit = min(int(resident_bytes * 1.25) + (2 << 20), 128 * 1024 * 1024)

    # Advisory cost estimate for XLA scheduling.
    flops = n_layers * (
        2 * width * n_pad * e_pad                 # gather
        + f_aug * width * e_pad                   # Z build (VPU)
        + 2 * width * f_aug * width * e_pad       # edge-kernel matmul
        + 2 * width * e_pad * n_pad               # sum aggregation
        + 2 * width * width * n_pad               # node linear
        + 3 * width * n_pad)                      # inv-deg scale + add + bias

    vmem = pl.BlockSpec(memory_space=pltpu.MemorySpace.VMEM)
    kernel = functools.partial(_gnk_kernel, n_layers, f_aug, width, compute_dtype)

    outT = pl.pallas_call(
        kernel,
        out_shape=jax.ShapeDtypeStruct((width, n_pad), jnp.float32),
        in_specs=[vmem] * 8,
        out_specs=vmem,
        scratch_shapes=[pltpu.VMEM((f_aug * width, e_pad), compute_dtype)],
        compiler_params=pltpu.CompilerParams(vmem_limit_bytes=vmem_limit),
        cost_estimate=pl.CostEstimate(
            flops=flops,
            transcendentals=n_layers * width * n_pad,
            bytes_accessed=int(resident_bytes)),
    )(xT, eaT, gatherT, aggT, inv_deg, wdr_all, wn_all, bn_all)

    return outT[:, :n_nodes].T                                             # (N, W) f32


# ----------------------------------------------------------------------------
# Pure-JAX reference (mirrors the PyTorch / PyG semantics) for verification.
# ----------------------------------------------------------------------------
def graph_neural_kernel_ref(x, edge_index, edge_attr, layer_params, width):
    src, dst = edge_index[0], edge_index[1]
    n_nodes = x.shape[0]
    for (wd, bd, wn, bn) in layer_params:
        k = (edge_attr @ wd + bd).reshape(-1, width, width)      # (E, W, W)
        msgs = jnp.einsum('eij,ej->ei', k, x[src])               # (E, W)
        summed = jax.ops.segment_sum(msgs, dst, num_segments=n_nodes)
        deg = jax.ops.segment_sum(jnp.ones((msgs.shape[0],), jnp.float32),
                                  dst, num_segments=n_nodes)
        mean = summed / jnp.maximum(deg, 1.0)[:, None]
        x = jnp.tanh(mean + x @ wn + bn)
    return x


# ----------------------------------------------------------------------------
if __name__ == "__main__":
    WIDTH = 32           # kernel width (node feature channels)
    EDGE_FEATURES = 4    # edge attribute dimension
    N_NODES = 32
    N_EDGES = 128
    N_LAYERS = 2

    key = jax.random.PRNGKey(0)
    key, kx, ks, kd, ke, kp = jax.random.split(key, 6)

    x = jax.random.normal(kx, (N_NODES, WIDTH), jnp.float32)
    src = jax.random.randint(ks, (N_EDGES,), 0, N_NODES)
    dst = jax.random.randint(kd, (N_EDGES,), 0, N_NODES)
    edge_index = jnp.stack([src, dst], axis=0)                    # (2, E)
    edge_attr = jax.random.normal(ke, (N_EDGES, EDGE_FEATURES), jnp.float32)

    layer_params = init_graph_neural_kernel(kp, WIDTH, EDGE_FEATURES, N_LAYERS)
    ref = graph_neural_kernel_ref(x, edge_index, edge_attr, layer_params, WIDTH)

    # --- exact-semantics configuration: f32 MXU operands --------------------
    params_f32 = prepare_gnk_params(layer_params, WIDTH, EDGE_FEATURES, jnp.float32)
    graph_f32 = prepare_graph(edge_index, edge_attr, N_NODES, jnp.float32)
    out_f32 = jax.block_until_ready(
        graph_neural_kernel_pallas(x, graph_f32, params_f32))
    np.testing.assert_allclose(np.asarray(out_f32), np.asarray(ref),
                               rtol=1e-4, atol=1e-5)

    # --- throughput configuration: bf16 MXU operands, f32 accumulation ------
    # (0/1 gather/agg matrices exact in bf16; looser tolerance only reflects
    #  bf16 rounding of x / edge_attr / weights.)
    params_bf16 = prepare_gnk_params(layer_params, WIDTH, EDGE_FEATURES, jnp.bfloat16)
    graph_bf16 = prepare_graph(edge_index, edge_attr, N_NODES, jnp.bfloat16)
    out_bf16 = jax.block_until_ready(
        graph_neural_kernel_pallas(x, graph_bf16, params_bf16))
    np.testing.assert_allclose(np.asarray(out_bf16), np.asarray(ref),
                               rtol=1e-1, atol=6e-2)

    print("KERNEL_OK")
</pallas_src>

<mosaic_0001>
module attributes {stable_mosaic.version = 11 : i64} {
  func.func @_gnk_kernel(%arg0: memref<32x128xf32, #tpu.memory_space<vmem>>, %arg1: memref<5x128xf32, #tpu.memory_space<vmem>>, %arg2: memref<128x128xf32, #tpu.memory_space<vmem>>, %arg3: memref<128x128xf32, #tpu.memory_space<vmem>>, %arg4: memref<1x128xf32, #tpu.memory_space<vmem>>, %arg5: memref<2x32x160xf32, #tpu.memory_space<vmem>>, %arg6: memref<2x32x32xf32, #tpu.memory_space<vmem>>, %arg7: memref<2x32x1xf32, #tpu.memory_space<vmem>>, %arg8: memref<32x128xf32, #tpu.memory_space<vmem>>, %arg9: memref<160x128xf32, #tpu.memory_space<vmem>>) attributes {dimension_semantics = [], scalar_prefetch = 0 : i64, scratch_operands = 1 : i64, tpu.core_type = #tpu.core_type<tc>} {
    %c0 = arith.constant 0 : index
    %c0_0 = arith.constant 0 : index
    %0 = vector.load %arg0[%c0, %c0_0] : memref<32x128xf32, #tpu.memory_space<vmem>>, vector<32x128xf32>
    %c0_1 = arith.constant 0 : index
    %c0_2 = arith.constant 0 : index
    %1 = vector.load %arg1[%c0_1, %c0_2] : memref<5x128xf32, #tpu.memory_space<vmem>>, vector<5x128xf32>
    %c0_3 = arith.constant 0 : index
    %c0_4 = arith.constant 0 : index
    %2 = vector.load %arg2[%c0_3, %c0_4] : memref<128x128xf32, #tpu.memory_space<vmem>>, vector<128x128xf32>
    %c0_5 = arith.constant 0 : index
    %c0_6 = arith.constant 0 : index
    %3 = vector.load %arg3[%c0_5, %c0_6] : memref<128x128xf32, #tpu.memory_space<vmem>>, vector<128x128xf32>
    %c0_7 = arith.constant 0 : index
    %c0_8 = arith.constant 0 : index
    %4 = vector.load %arg4[%c0_7, %c0_8] : memref<1x128xf32, #tpu.memory_space<vmem>>, vector<1x128xf32>
    %cst = arith.constant dense<0.000000e+00> : vector<32x128xf32>
    %5 = tpu.matmul %0, %2, %cst {dimension_numbers = #tpu.dot_dimension_numbers<[1], [0], [0], [1], [0, 0, 1, 1], [], []>} : vector<32x128xf32>, vector<128x128xf32>, vector<32x128xf32> -> vector<32x128xf32>
    %6 = vector.extract_strided_slice %1 {offsets = [0, 0], sizes = [1, 128], strides = [1, 1]} : vector<5x128xf32> to vector<1x128xf32>
    %7 = vector.broadcast %6 : vector<1x128xf32> to vector<32x128xf32>
    %8 = arith.mulf %7, %5 : vector<32x128xf32>
    %c0_9 = arith.constant 0 : index
    %c0_10 = arith.constant 0 : index
    %9 = vector.load %arg9[%c0_9, %c0_10] : memref<160x128xf32, #tpu.memory_space<vmem>>, vector<32x128xf32>
    tpu.vector_store %arg9[%c0_9, %c0_10], %8 {strides = array<i32>} : memref<160x128xf32, #tpu.memory_space<vmem>>, vector<32x128xf32>,
    %10 = vector.extract_strided_slice %1 {offsets = [1, 0], sizes = [1, 128], strides = [1, 1]} : vector<5x128xf32> to vector<1x128xf32>
    %11 = vector.broadcast %10 : vector<1x128xf32> to vector<32x128xf32>
    %12 = arith.mulf %11, %5 : vector<32x128xf32>
    %c32 = arith.constant 32 : index
    %c0_11 = arith.constant 0 : index
    %13 = vector.load %arg9[%c32, %c0_11] : memref<160x128xf32, #tpu.memory_space<vmem>>, vector<32x128xf32>
    tpu.vector_store %arg9[%c32, %c0_11], %12 {strides = array<i32>} : memref<160x128xf32, #tpu.memory_space<vmem>>, vector<32x128xf32>,
    %14 = vector.extract_strided_slice %1 {offsets = [2, 0], sizes = [1, 128], strides = [1, 1]} : vector<5x128xf32> to vector<1x128xf32>
    %15 = vector.broadcast %14 : vector<1x128xf32> to vector<32x128xf32>
    %16 = arith.mulf %15, %5 : vector<32x128xf32>
    %c64 = arith.constant 64 : index
    %c0_12 = arith.constant 0 : index
    %17 = vector.load %arg9[%c64, %c0_12] : memref<160x128xf32, #tpu.memory_space<vmem>>, vector<32x128xf32>
    tpu.vector_store %arg9[%c64, %c0_12], %16 {strides = array<i32>} : memref<160x128xf32, #tpu.memory_space<vmem>>, vector<32x128xf32>,
    %18 = vector.extract_strided_slice %1 {offsets = [3, 0], sizes = [1, 128], strides = [1, 1]} : vector<5x128xf32> to vector<1x128xf32>
    %19 = vector.broadcast %18 : vector<1x128xf32> to vector<32x128xf32>
    %20 = arith.mulf %19, %5 : vector<32x128xf32>
    %c96 = arith.constant 96 : index
    %c0_13 = arith.constant 0 : index
    %21 = vector.load %arg9[%c96, %c0_13] : memref<160x128xf32, #tpu.memory_space<vmem>>, vector<32x128xf32>
    tpu.vector_store %arg9[%c96, %c0_13], %20 {strides = array<i32>} : memref<160x128xf32, #tpu.memory_space<vmem>>, vector<32x128xf32>,
    %22 = vector.extract_strided_slice %1 {offsets = [4, 0], sizes = [1, 128], strides = [1, 1]} : vector<5x128xf32> to vector<1x128xf32>
    %23 = vector.broadcast %22 : vector<1x128xf32> to vector<32x128xf32>
    %24 = arith.mulf %23, %5 : vector<32x128xf32>
    %c128 = arith.constant 128 : index
    %c0_14 = arith.constant 0 : index
    %25 = vector.load %arg9[%c128, %c0_14] : memref<160x128xf32, #tpu.memory_space<vmem>>, vector<32x128xf32>
    tpu.vector_store %arg9[%c128, %c0_14], %24 {strides = array<i32>} : memref<160x128xf32, #tpu.memory_space<vmem>>, vector<32x128xf32>,
    %c0_15 = arith.constant 0 : index
    %c0_16 = arith.constant 0 : index
    %c0_17 = arith.constant 0 : index
    %26 = vector.load %arg5[%c0_15, %c0_16, %c0_17] : memref<2x32x160xf32, #tpu.memory_space<vmem>>, vector<1x32x160xf32>
    %27 = vector.shape_cast %26 : vector<1x32x160xf32> to vector<32x160xf32>
    %c0_18 = arith.constant 0 : index
    %c0_19 = arith.constant 0 : index
    %28 = vector.load %arg9[%c0_18, %c0_19] : memref<160x128xf32, #tpu.memory_space<vmem>>, vector<160x128xf32>
    %cst_20 = arith.constant dense<0.000000e+00> : vector<32x128xf32>
    %29 = tpu.matmul %27, %28, %cst_20 {dimension_numbers = #tpu.dot_dimension_numbers<[1], [0], [0], [1], [0, 0, 1, 1], [], []>} : vector<32x160xf32>, vector<160x128xf32>, vector<32x128xf32> -> vector<32x128xf32>
    %cst_21 = arith.constant dense<0.000000e+00> : vector<32x128xf32>
    %30 = tpu.matmul %29, %3, %cst_21 {dimension_numbers = #tpu.dot_dimension_numbers<[1], [0], [0], [1], [0, 0, 1, 1], [], []>} : vector<32x128xf32>, vector<128x128xf32>, vector<32x128xf32> -> vector<32x128xf32>
    %31 = vector.broadcast %4 : vector<1x128xf32> to vector<32x128xf32>
    %32 = arith.mulf %30, %31 : vector<32x128xf32>
    %c0_22 = arith.constant 0 : index
    %c0_23 = arith.constant 0 : index
    %c0_24 = arith.constant 0 : index
    %33 = vector.load %arg6[%c0_22, %c0_23, %c0_24] : memref<2x32x32xf32, #tpu.memory_space<vmem>>, vector<1x32x32xf32>
    %34 = vector.shape_cast %33 : vector<1x32x32xf32> to vector<32x32xf32>
    %cst_25 = arith.constant dense<0.000000e+00> : vector<32x128xf32>
    %35 = tpu.matmul %34, %0, %cst_25 {dimension_numbers = #tpu.dot_dimension_numbers<[1], [0], [0], [1], [0, 0, 1, 1], [], []>} : vector<32x32xf32>, vector<32x128xf32>, vector<32x128xf32> -> vector<32x128xf32>
    %c0_26 = arith.constant 0 : index
    %c0_27 = arith.constant 0 : index
    %c0_28 = arith.constant 0 : index
    %36 = vector.load %arg7[%c0_26, %c0_27, %c0_28] : memref<2x32x1xf32, #tpu.memory_space<vmem>>, vector<1x32x1xf32>
    %37 = vector.shape_cast %36 : vector<1x32x1xf32> to vector<32x1xf32>
    %38 = vector.broadcast %37 : vector<32x1xf32> to vector<32x128xf32>
    %39 = arith.addf %35, %38 : vector<32x128xf32>
    %40 = arith.addf %32, %39 : vector<32x128xf32>
    %41 = math.tanh %40 : vector<32x128xf32>
    %cst_29 = arith.constant dense<0.000000e+00> : vector<32x128xf32>
    %42 = tpu.matmul %41, %2, %cst_29 {dimension_numbers = #tpu.dot_dimension_numbers<[1], [0], [0], [1], [0, 0, 1, 1], [], []>} : vector<32x128xf32>, vector<128x128xf32>, vector<32x128xf32> -> vector<32x128xf32>
    %43 = vector.extract_strided_slice %1 {offsets = [0, 0], sizes = [1, 128], strides = [1, 1]} : vector<5x128xf32> to vector<1x128xf32>
    %44 = vector.broadcast %43 : vector<1x128xf32> to vector<32x128xf32>
    %45 = arith.mulf %44, %42 : vector<32x128xf32>
    %c0_30 = arith.constant 0 : index
    %c0_31 = arith.constant 0 : index
    %46 = vector.load %arg9[%c0_30, %c0_31] : memref<160x128xf32, #tpu.memory_space<vmem>>, vector<32x128xf32>
    tpu.vector_store %arg9[%c0_30, %c0_31], %45 {strides = array<i32>} : memref<160x128xf32, #tpu.memory_space<vmem>>, vector<32x128xf32>,
    %47 = vector.extract_strided_slice %1 {offsets = [1, 0], sizes = [1, 128], strides = [1, 1]} : vector<5x128xf32> to vector<1x128xf32>
    %48 = vector.broadcast %47 : vector<1x128xf32> to vector<32x128xf32>
    %49 = arith.mulf %48, %42 : vector<32x128xf32>
    %c32_32 = arith.constant 32 : index
    %c0_33 = arith.constant 0 : index
    %50 = vector.load %arg9[%c32_32, %c0_33] : memref<160x128xf32, #tpu.memory_space<vmem>>, vector<32x128xf32>
    tpu.vector_store %arg9[%c32_32, %c0_33], %49 {strides = array<i32>} : memref<160x128xf32, #tpu.memory_space<vmem>>, vector<32x128xf32>,
    %51 = vector.extract_strided_slice %1 {offsets = [2, 0], sizes = [1, 128], strides = [1, 1]} : vector<5x128xf32> to vector<1x128xf32>
    %52 = vector.broadcast %51 : vector<1x128xf32> to vector<32x128xf32>
    %53 = arith.mulf %52, %42 : vector<32x128xf32>
    %c64_34 = arith.constant 64 : index
    %c0_35 = arith.constant 0 : index
    %54 = vector.load %arg9[%c64_34, %c0_35] : memref<160x128xf32, #tpu.memory_space<vmem>>, vector<32x128xf32>
    tpu.vector_store %arg9[%c64_34, %c0_35], %53 {strides = array<i32>} : memref<160x128xf32, #tpu.memory_space<vmem>>, vector<32x128xf32>,
    %55 = vector.extract_strided_slice %1 {offsets = [3, 0], sizes = [1, 128], strides = [1, 1]} : vector<5x128xf32> to vector<1x128xf32>
    %56 = vector.broadcast %55 : vector<1x128xf32> to vector<32x128xf32>
    %57 = arith.mulf %56, %42 : vector<32x128xf32>
    %c96_36 = arith.constant 96 : index
    %c0_37 = arith.constant 0 : index
    %58 = vector.load %arg9[%c96_36, %c0_37] : memref<160x128xf32, #tpu.memory_space<vmem>>, vector<32x128xf32>
    tpu.vector_store %arg9[%c96_36, %c0_37], %57 {strides = array<i32>} : memref<160x128xf32, #tpu.memory_space<vmem>>, vector<32x128xf32>,
    %59 = vector.extract_strided_slice %1 {offsets = [4, 0], sizes = [1, 128], strides = [1, 1]} : vector<5x128xf32> to vector<1x128xf32>
    %60 = vector.broadcast %59 : vector<1x128xf32> to vector<32x128xf32>
    %61 = arith.mulf %60, %42 : vector<32x128xf32>
    %c128_38 = arith.constant 128 : index
    %c0_39 = arith.constant 0 : index
    %62 = vector.load %arg9[%c128_38, %c0_39] : memref<160x128xf32, #tpu.memory_space<vmem>>, vector<32x128xf32>
    tpu.vector_store %arg9[%c128_38, %c0_39], %61 {strides = array<i32>} : memref<160x128xf32, #tpu.memory_space<vmem>>, vector<32x128xf32>,
    %c1 = arith.constant 1 : index
    %c0_40 = arith.constant 0 : index
    %c0_41 = arith.constant 0 : index
    %63 = vector.load %arg5[%c1, %c0_40, %c0_41] : memref<2x32x160xf32, #tpu.memory_space<vmem>>, vector<1x32x160xf32>
    %64 = vector.shape_cast %63 : vector<1x32x160xf32> to vector<32x160xf32>
    %c0_42 = arith.constant 0 : index
    %c0_43 = arith.constant 0 : index
    %65 = vector.load %arg9[%c0_42, %c0_43] : memref<160x128xf32, #tpu.memory_space<vmem>>, vector<160x128xf32>
    %cst_44 = arith.constant dense<0.000000e+00> : vector<32x128xf32>
    %66 = tpu.matmul %64, %65, %cst_44 {dimension_numbers = #tpu.dot_dimension_numbers<[1], [0], [0], [1], [0, 0, 1, 1], [], []>} : vector<32x160xf32>, vector<160x128xf32>, vector<32x128xf32> -> vector<32x128xf32>
    %cst_45 = arith.constant dense<0.000000e+00> : vector<32x128xf32>
    %67 = tpu.matmul %66, %3, %cst_45 {dimension_numbers = #tpu.dot_dimension_numbers<[1], [0], [0], [1], [0, 0, 1, 1], [], []>} : vector<32x128xf32>, vector<128x128xf32>, vector<32x128xf32> -> vector<32x128xf32>
    %68 = vector.broadcast %4 : vector<1x128xf32> to vector<32x128xf32>
    %69 = arith.mulf %67, %68 : vector<32x128xf32>
    %c1_46 = arith.constant 1 : index
    %c0_47 = arith.constant 0 : index
    %c0_48 = arith.constant 0 : index
    %70 = vector.load %arg6[%c1_46, %c0_47, %c0_48] : memref<2x32x32xf32, #tpu.memory_space<vmem>>, vector<1x32x32xf32>
    %71 = vector.shape_cast %70 : vector<1x32x32xf32> to vector<32x32xf32>
    %cst_49 = arith.constant dense<0.000000e+00> : vector<32x128xf32>
    %72 = tpu.matmul %71, %41, %cst_49 {dimension_numbers = #tpu.dot_dimension_numbers<[1], [0], [0], [1], [0, 0, 1, 1], [], []>} : vector<32x32xf32>, vector<32x128xf32>, vector<32x128xf32> -> vector<32x128xf32>
    %c1_50 = arith.constant 1 : index
    %c0_51 = arith.constant 0 : index
    %c0_52 = arith.constant 0 : index
    %73 = vector.load %arg7[%c1_50, %c0_51, %c0_52] : memref<2x32x1xf32, #tpu.memory_space<vmem>>, vector<1x32x1xf32>
    %74 = vector.shape_cast %73 : vector<1x32x1xf32> to vector<32x1xf32>
    %75 = vector.broadcast %74 : vector<32x1xf32> to vector<32x128xf32>
    %76 = arith.addf %72, %75 : vector<32x128xf32>
    %77 = arith.addf %69, %76 : vector<32x128xf32>
    %78 = math.tanh %77 : vector<32x128xf32>
    %c0_53 = arith.constant 0 : index
    %c0_54 = arith.constant 0 : index
    %79 = vector.load %arg8[%c0_53, %c0_54] : memref<32x128xf32, #tpu.memory_space<vmem>>, vector<32x128xf32>
    tpu.vector_store %arg8[%c0_53, %c0_54], %78 {strides = array<i32>} : memref<32x128xf32, #tpu.memory_space<vmem>>, vector<32x128xf32>,
    return
  }
}

</mosaic_0001>

<bundles_post_ra>
// kernel: graph_neural_kernel_pallas.1
= control target key start
LH: loop header
LB: loop body
LE: loop exit
PB: predicated region body
PF: predicated region fallthrough
CT: control target
= control target key end

     0   :  { %13 = vsyncpa [#allocation4], 0  ;;  %s2050_s0 = inlined_call_operand.vmem [shape: f32[32,128], index: 0, kind: input, shape index: {}]   ;;  %s2051_s1 = inlined_call_operand.hbm [shape: f32[5,128], index: 1, kind: input, shape index: {}]   ;;  %s2052_s2 = inlined_call_operand.vmem [shape: f32[128,128], index: 2, kind: input, shape index: {}]   ;;  %s2053_s3 = inlined_call_operand.vmem [shape: f32[128,128], index: 3, kind: input, shape index: {}]   ;;  %s2054_s4 = inlined_call_operand.vmem [shape: f32[1,128], index: 4, kind: input, shape index: {}]   ;;  %s2055_s5 = inlined_call_operand.hbm [shape: f32[2,32,160], index: 5, kind: input, shape index: {}]   ;;  %s2056_s6 = inlined_call_operand.hbm [shape: f32[2,32,32], index: 6, kind: input, shape index: {}]   ;;  %s2057_s7 = inlined_call_operand.vmem [shape: f32[2,32,1], index: 7, kind: input, shape index: {}]   ;;  %s2058_s8 = inlined_call_operand.vmem [shape: f32[32,128], index: 8, kind: output, shape index: {}]  }
   0x1   :  { %14 = vsyncpa [#allocation6], 0  ;;  %s1478_s27 = smov [#allocation5]  }
   0x2   :  { %s38_s28 = sshll.u32 %s1478_s27, 4  ;;  %s39_s28 = int_to_ptr.vmem [resolvable:$true] %s38_s28 }
   0x3   :  { %s1422_s29 = scalar_lea.vmem %s39_s28, 2048  ;;  %p1427_p1 = scmp.lt.s32.totalorder %s39_s28, %s39_s28 }
   0x4   :  { %p1423_p0 = scmp.ne.s32.totalorder %s39_s28, %s1422_s29  ;;  %p1428_p2 = scmp.lt.s32.totalorder %s1422_s29, %s1422_s29 }
   0x6   :  { %p1429_p3 = por %p1428_p2, %p1427_p1 }
   0x8   :  { %p1430_p4 = pnand %p1429_p3, %p1423_p0 }
   0xa   :  { %1433 = shalt.err (!%p1430_p4)
}
   0xb   :  { %s1479_s30 = smov 256   ;;  %s1480_s9 = smov 16  }
   0xc   :  { %44 = dma.hbm_to_vmem [thread:$0]  %s2055_s5, 2048, %s39_s28, [#allocation6], %s1479_s30, %s1479_s30, %s1480_s9  }
   0xd   :  { %s1481_s12 = smov [#allocation3]   ;;  %s1482_s14 = smov [#allocation7]  }
   0xe   :  { %s23_s13 = sshll.u32 %s1481_s12, 4  ;;  %s50_s15 = sshll.u32 %s1482_s14, 4  ;;  %s24_s13 = int_to_ptr.vmem [resolvable:$true] %s23_s13  ;;  %s51_s15 = int_to_ptr.vmem [resolvable:$true] %s50_s15 }
   0xf   :  { %s1442_s16 = scalar_lea.vmem %s24_s13, 128  ;;  %p1447_p6 = scmp.lt.s32.totalorder %s24_s13, %s24_s13 }
  0x10   :  { %p1443_p5 = scmp.ne.s32.totalorder %s24_s13, %s1442_s16  ;;  %p1448_p7 = scmp.lt.s32.totalorder %s1442_s16, %s1442_s16 }
  0x12   :  { %p1449_p8 = por %p1448_p7, %p1447_p6 }
  0x14   :  { %p1450_p9 = pnand %p1449_p8, %p1443_p5 }
  0x16   :  { %1453 = shalt.err (!%p1450_p9)
}
  0x17   :  { %26 = dma.hbm_to_vmem [thread:$0]  %s2051_s1, 128, %s24_s13, [#allocation4]  }
  0x18   :  { %s1462_s19 = scalar_lea.vmem %s51_s15, 1024  ;;  %p1467_p11 = scmp.lt.s32.totalorder %s51_s15, %s51_s15 }
  0x19   :  { %p1463_p10 = scmp.ne.s32.totalorder %s51_s15, %s1462_s19  ;;  %p1468_p12 = scmp.lt.s32.totalorder %s1462_s19, %s1462_s19 }
  0x1b   :  { %p1469_p13 = por %p1468_p12, %p1467_p11 }
  0x1d   :  { %p1470_p0 = pnand %p1469_p13, %p1463_p10 }
  0x1f   :  { %1473 = shalt.err (!%p1470_p0)
}
  0x20   :  { %s1483_s5 = smov 128   ;;  %s1484_s20 = smov 8  }
  0x21   :  { %56 = dma.hbm_to_vmem [thread:$0]  %s2056_s6, 1024, %s51_s15, [#allocation6], %s1483_s5, %s1483_s5, %s1484_s20  }
  0x22   :  { %1474 = dma.done.wait [#allocation4], 128  }
  0x23   :  { %1475 = vsyncadd [#allocation4], 4294967168 }
  0x24   :  { %1476 = dma.done.wait [#allocation6], 3072  }
  0x25   :  { %1477 = vsyncadd [#allocation6], 4294964224  ;;  %v1544_v0 = vld [vmem:[%s2052_s2 + $0x78] sm:$0xff]  ;;  %v1549_v1 = vld [vmem:[%s2052_s2 + $0x70] sm:$0xff]  ;;  %v1485_v20 = vmov 0.0   ;;  %vm279_vm0 = vcmask 261120   ;;  %v191_v36 = vlaneseq }
  0x26   :  { %1207 = vmatprep.subr.mxu0 %v1544_v0  ;;  %v1556_v2 = vld [vmem:[%s2052_s2 + $0x68] sm:$0xff]  ;;  %v1563_v3 = vld [vmem:[%s2052_s2 + $0x60] sm:$0xff]  ;;  %v1575_v5 = vld [vmem:[%s2052_s2 + $0x58] sm:$0xff]  ;;  %292 = vmatprep.subr.mxu1 %v1485_v20 }
  0x27   :  { %1208 = vmatpush3.msra.mxu0 %v1544_v0  ;;  %v1569_v4 = vld [vmem:[%s2050_s0] sm:$0xff]  ;;  %v1583_v6 = vld [vmem:[%s2052_s2 + $0x50] sm:$0xff]  ;;  %v1590_v7 = vld [vmem:[%s2052_s2 + $0x48] sm:$0xff]  ;;  %v192_v37 = vshrl.u32 %v191_v36, 7 }
  0x28   :  { %1209 = vmatprep.subr.mxu0 %v1549_v1  ;;  %1239 = vmatprep.mubr.f32.mxu0 %v1569_v4  ;;  %v1597_v8 = vld [vmem:[%s2052_s2 + $0x40] sm:$0xff]  ;;  %v1604_v9 = vld [vmem:[%s2052_s2 + $0x38] sm:$0xff]  ;;  %v1611_v10 = vld [vmem:[%s2052_s2 + $0x30] sm:$0xff] }
  0x29   :  { %1210 = vmatpush3.msra.mxu0 %v1549_v1  ;;  %v1618_v11 = vld [vmem:[%s2052_s2 + $0x28] sm:$0xff]  ;;  %v1625_v12 = vld [vmem:[%s2052_s2 + $0x20] sm:$0xff]  ;;  %v1632_v13 = vld [vmem:[%s2052_s2 + $0x18] sm:$0xff]  ;;  %v229_v38 = vsub.s32 3, %v192_v37  ;;  %v217_v47 = vsub.s32 2, %v192_v37  ;;  %v205_v53 = vsub.s32 1, %v192_v37 }
  0x2a   :  { %1211 = vmatprep.subr.mxu0 %v1556_v2  ;;  %v1639_v14 = vld [vmem:[%s2052_s2 + $0x10] sm:$0xff]  ;;  %v1646_v15 = vld [vmem:[%s2052_s2 + $0x8] sm:$0xff]  ;;  %v1653_v16 = vld [vmem:[%s2052_s2] sm:$0xff]  ;;  %v193_v59 = vsub.s32 0, %v192_v37  ;;  %v241_v36 = vsub.s32 4, %v192_v37 }
  0x2b   :  { %1212 = vmatpush3.msra.mxu0 %v1556_v2  ;;  %v1660_v17 = vld [vmem:[%s2050_s0 + $0x8] sm:$0xff]  ;;  %v1666_v18 = vld [vmem:[%s2050_s0 + $0x10] sm:$0xff]  ;;  %v1674_v19 = vld [vmem:[%s2050_s0 + $0x18] sm:$0xff] }
  0x2c   :  { %1213 = vmatprep.subr.mxu0 %v1563_v3  ;;  %v252_v21 = vld [vmem:[#allocation5 + $0x8] sm:$0xff]  ;;  %v1682_v22 = vld [vmem:[%s2053_s3 + $0x78] sm:$0xff]  ;;  %v1694_v24 = vld [vmem:[%s2053_s3 + $0x68] sm:$0xff] }
  0x2d   :  { %1214 = vmatpush3.msra.mxu0 %v1563_v3  ;;  %1090 = vmatprep.mubr.msk.f32.mxu1 %vm279_vm0, %v252_v21  ;;  %v1687_v23 = vld [vmem:[%s2053_s3 + $0x70] sm:$0xff]  ;;  %v1701_v25 = vld [vmem:[%s2053_s3 + $0x60] sm:$0xff]  ;;  %v1708_v26 = vld [vmem:[%s2053_s3 + $0x58] sm:$0xff] }
  0x2e   :  { %1215 = vmatprep.subr.mxu0 %v1575_v5  ;;  %v1715_v27 = vld [vmem:[%s2053_s3 + $0x50] sm:$0xff]  ;;  %v1722_v28 = vld [vmem:[%s2053_s3 + $0x48] sm:$0xff]  ;;  %v1729_v29 = vld [vmem:[%s2053_s3 + $0x40] sm:$0xff] }
  0x2f   :  { %1216 = vmatpush3.msra.mxu0 %v1575_v5  ;;  %v1736_v30 = vld [vmem:[%s2053_s3 + $0x38] sm:$0xff]  ;;  %v1743_v31 = vld [vmem:[%s2053_s3 + $0x30] sm:$0xff]  ;;  %v1750_v32 = vld [vmem:[%s2053_s3 + $0x28] sm:$0xff] }
  0x30   :  { %1217 = vmatprep.subr.mxu0 %v1583_v6  ;;  %v1757_v33 = vld [vmem:[%s2053_s3 + $0x20] sm:$0xff]  ;;  %v1764_v34 = vld [vmem:[%s2053_s3 + $0x18] sm:$0xff]  ;;  %v1771_v35 = vld [vmem:[%s2053_s3 + $0x10] sm:$0xff] }
  0x31   :  { %1218 = vmatpush3.msra.mxu0 %v1583_v6  ;;  %v72_v40 = vld [vmem:[#allocation3] sm:$0x1f] }
  0x32   :  { %1219 = vmatprep.subr.mxu0 %v1590_v7  ;;  %v1781_v42 = vrot.slane %v72_v40, %v229_v38  ;;  %v1791_v50 = vrot.slane %v72_v40, %v217_v47  ;;  %v1803_v56 = vrot.slane %v72_v40, %v205_v53  ;;  %v1815_v62 = vrot.slane %v72_v40, %v193_v59  ;;  %v474_v53 = vld [vmem:[#allocation7 + $0x10] sm:$0xff] }
  0x33   :  { %1220 = vmatpush3.msra.mxu0 %v1590_v7  ;;  %v1106_v59 = vld [vmem:[%s2057_s7 + $0x38] sm:$0xff] }
  0x34   :  { %1221 = vmatprep.subr.mxu0 %v1597_v8 }
  0x35   :  { %1222 = vmatpush3.msra.mxu0 %v1597_v8 }
  0x36   :  { %1223 = vmatprep.subr.mxu0 %v1604_v9 }
  0x37   :  { %1224 = vmatpush3.msra.mxu0 %v1604_v9 }
  0x38   :  { %1225 = vmatprep.subr.mxu0 %v1611_v10 }
  0x39   :  { %1226 = vmatpush3.msra.mxu0 %v1611_v10 }
  0x3a   :  { %1227 = vmatprep.subr.mxu0 %v1618_v11 }
  0x3b   :  { %1228 = vmatpush3.msra.mxu0 %v1618_v11 }
  0x3c   :  { %1229 = vmatprep.subr.mxu0 %v1625_v12 }
  0x3d   :  { %1230 = vmatpush3.msra.mxu0 %v1625_v12 }
  0x3e   :  { %1231 = vmatprep.subr.mxu0 %v1632_v13 }
  0x3f   :  { %1232 = vmatpush3.msra.mxu0 %v1632_v13 }
  0x40   :  { %1233 = vmatprep.subr.mxu0 %v1639_v14 }
  0x41   :  { %1234 = vmatpush3.msra.mxu0 %v1639_v14 }
  0x42   :  { %1235 = vmatprep.subr.mxu0 %v1646_v15 }
  0x43   :  { %1236 = vmatpush3.msra.mxu0 %v1646_v15 }
  0x44   :  { %1237 = vmatprep.subr.mxu0 %v1653_v16 }
  0x45   :  { %1238 = vmatpush3.msra.mxu0 %v1653_v16 }
  0x46   :  { %1240 = vmatmul.mubr.f32.vlgmr.msra.gmra.mxu0 %v1660_v17  ;;  %1245 = vmatprep.subr.mxu0 %v1682_v22 }
  0x47   :  { %1242 = vmatprep.mubr.f32.mxu0 %v1666_v18  ;;  %1246 = vmatpush3.msra.mxu0 %v1682_v22 }
  0x48   :  { %1247 = vmatprep.subr.mxu0 %v1687_v23 }
  0x49   :  { %1248 = vmatpush3.msra.mxu0 %v1687_v23 }
  0x4a   :  { %1243 = vmatmul.mubr.f32.gmra.mxu0 %v1674_v19  ;;  %1249 = vmatprep.subr.mxu0 %v1694_v24 }
  0x4b   :  { %1250 = vmatpush3.msra.mxu0 %v1694_v24 }
  0x4c   :  { %1251 = vmatprep.subr.mxu0 %v1701_v25 }
  0x4d   :  { %1252 = vmatpush3.msra.mxu0 %v1701_v25 }
  0x4e   :  { %1253 = vmatprep.subr.mxu0 %v1708_v26 }
  0x4f   :  { %1254 = vmatpush3.msra.mxu0 %v1708_v26 }
  0x50   :  { %1255 = vmatprep.subr.mxu0 %v1715_v27 }
  0x51   :  { %1256 = vmatpush3.msra.mxu0 %v1715_v27 }
  0x52   :  { %1257 = vmatprep.subr.mxu0 %v1722_v28 }
  0x53   :  { %1258 = vmatpush3.msra.mxu0 %v1722_v28 }
  0x54   :  { %1259 = vmatprep.subr.mxu0 %v1729_v29 }
  0x55   :  { %1260 = vmatpush3.msra.mxu0 %v1729_v29 }
  0x56   :  { %1261 = vmatprep.subr.mxu0 %v1736_v30 }
  0x57   :  { %1262 = vmatpush3.msra.mxu0 %v1736_v30 }
  0x58   :  { %1263 = vmatprep.subr.mxu0 %v1743_v31 }
  0x59   :  { %1264 = vmatpush3.msra.mxu0 %v1743_v31 }
  0x5a   :  { %1265 = vmatprep.subr.mxu0 %v1750_v32 }
  0x5b   :  { %1266 = vmatpush3.msra.mxu0 %v1750_v32 }
  0x5c   :  { %1267 = vmatprep.subr.mxu0 %v1757_v33 }
  0x5d   :  { %1268 = vmatpush3.msra.mxu0 %v1757_v33 }
  0x5e   :  { %1269 = vmatprep.subr.mxu0 %v1764_v34 }
  0x5f   :  { %1270 = vmatpush3.msra.mxu0 %v1764_v34 }
  0x60   :  { %1271 = vmatprep.subr.mxu0 %v1771_v35 }
  0x61   :  { %1272 = vmatpush3.msra.mxu0 %v1771_v35 }
 0x106   :  { %v1777_v39 = vpop.f32.mrf.mxu0 }
 0x107   :  { %v232_v48 = vmul.f32 %v1777_v39, %v1781_v42  ;;  %v220_v54 = vmul.f32 %v1777_v39, %v1791_v50  ;;  %v208_v60 = vmul.f32 %v1777_v39, %v1803_v56  ;;  %v196_v38 = vmul.f32 %v1777_v39, %v1815_v62 }
 0x108   :  { %v1779_v41 = vpop.f32.mrf.mxu0 }
 0x109   :  { %v231_v49 = vmul.f32 %v1781_v42, %v1779_v41  ;;  %v219_v55 = vmul.f32 %v1791_v50, %v1779_v41  ;;  %v207_v61 = vmul.f32 %v1803_v56, %v1779_v41 }
 0x10a   :  { %v1244_v43 = vpop.f32.mrf.mxu0 }
 0x10b   :  { %v234_v44 = vmul.f32 %v1244_v43, %v1781_v42  ;;  %v222_v51 = vmul.f32 %v1244_v43, %v1791_v50  ;;  %v210_v57 = vmul.f32 %v1244_v43, %v1803_v56  ;;  %v198_v63 = vmul.f32 %v1244_v43, %v1815_v62 }
 0x10c   :  { %v182_v45 = vpop.f32.mrf.mxu0 }
 0x10d   :  { %293 = vmatpush1.msra.mxu1 %v234_v44  ;;  %v233_v46 = vmul.f32 %v1781_v42, %v182_v45  ;;  %v221_v52 = vmul.f32 %v1791_v50, %v182_v45  ;;  %v209_v58 = vmul.f32 %v1803_v56, %v182_v45  ;;  %v197_v21 = vmul.f32 %v1815_v62, %v182_v45 }
 0x10e   :  { %294 = vmatprep.subr.mxu1 %v1485_v20  ;;  %v195_v44 = vmul.f32 %v1815_v62, %v1779_v41 }
 0x10f   :  { %295 = vmatpush1.msra.mxu1 %v233_v46  ;;  %v1827_v46 = vrot.slane %v72_v40, %v241_v36 }
 0x110   :  { %296 = vmatprep.subr.mxu1 %v1485_v20 }
 0x111   :  { %297 = vmatpush1.msra.mxu1 %v232_v48  ;;  %v246_v47 = vmul.f32 %v1244_v43, %v1827_v46  ;;  %v245_v37 = vmul.f32 %v1827_v46, %v182_v45  ;;  %v244_v48 = vmul.f32 %v1777_v39, %v1827_v46  ;;  %v243_v40 = vmul.f32 %v1827_v46, %v1779_v41  ;;  %v254_v43 = vld [vmem:[#allocation5 + $0x18] sm:$0xff]  ;;  %v253_v45 = vld [vmem:[#allocation5 + $0x10] sm:$0xff]  ;;  %v256_v39 = vld [vmem:[#allocation5 + $0x28] sm:$0xff] }
 0x112   :  { %298 = vmatprep.subr.mxu1 %v1485_v20  ;;  %v255_v41 = vld [vmem:[#allocation5 + $0x20] sm:$0xff] }
 0x113   :  { %299 = vmatpush1.msra.mxu1 %v231_v49  ;;  %v251_v49 = vld [vmem:[#allocation5] sm:$0xff] }
 0x114   :  { %300 = vmatprep.subr.mxu1 %v1485_v20 }
 0x115   :  { %301 = vmatpush1.msra.mxu1 %v222_v51  ;;  %v258_v51 = vld [vmem:[#allocation5 + $0x38] sm:$0xff] }
 0x116   :  { %302 = vmatprep.subr.mxu1 %v1485_v20 }
 0x117   :  { %303 = vmatpush1.msra.mxu1 %v221_v52  ;;  %v473_v52 = vld [vmem:[#allocation7 + $0x8] sm:$0xff] }
 0x118   :  { %304 = vmatprep.subr.mxu1 %v1485_v20 }
 0x119   :  { %305 = vmatpush1.msra.mxu1 %v220_v54  ;;  %v475_v54 = vld [vmem:[#allocation7 + $0x18] sm:$0xff] }
 0x11a   :  { %306 = vmatprep.subr.mxu1 %v1485_v20 }
 0x11b   :  { %307 = vmatpush1.msra.mxu1 %v219_v55  ;;  %v478_v55 = vld [vmem:[%s2057_s7 + $0x10] sm:$0xff] }
 0x11c   :  { %308 = vmatprep.subr.mxu1 %v1485_v20 }
 0x11d   :  { %309 = vmatpush1.msra.mxu1 %v210_v57  ;;  %v479_v57 = vld [vmem:[%s2057_s7 + $0x18] sm:$0xff] }
 0x11e   :  { %310 = vmatprep.subr.mxu1 %v1485_v20 }
 0x11f   :  { %311 = vmatpush1.msra.mxu1 %v209_v58  ;;  %v1104_v58 = vld [vmem:[%s2057_s7 + $0x28] sm:$0xff] }
 0x120   :  { %312 = vmatprep.subr.mxu1 %v1485_v20 }
 0x121   :  { %313 = vmatpush1.msra.mxu1 %v208_v60 }
 0x122   :  { %314 = vmatprep.subr.mxu1 %v1485_v20 }
 0x123   :  { %315 = vmatpush1.msra.mxu1 %v207_v61 }
 0x124   :  { %316 = vmatprep.subr.mxu1 %v1485_v20 }
 0x125   :  { %317 = vmatpush1.msra.mxu1 %v198_v63 }
 0x126   :  { %318 = vmatprep.subr.mxu1 %v1485_v20 }
 0x127   :  { %319 = vmatpush1.msra.mxu1 %v197_v21 }
 0x128   :  { %320 = vmatprep.subr.mxu1 %v1485_v20 }
 0x129   :  { %321 = vmatpush1.msra.mxu1 %v196_v38 }
 0x12a   :  { %322 = vmatprep.subr.mxu1 %v1485_v20 }
 0x12b   :  { %323 = vmatpush1.msra.mxu1 %v195_v44 }
 0x12c   :  { %348 = vmatprep.subr.mxu1 %v1485_v20 }
 0x12d   :  { %349 = vmatpush2.msra.mxu1 %v246_v47 }
 0x12e   :  { %350 = vmatprep.subr.mxu1 %v1485_v20 }
 0x12f   :  { %351 = vmatpush2.msra.mxu1 %v245_v37 }
 0x130   :  { %352 = vmatprep.subr.mxu1 %v1485_v20 }
 0x131   :  { %353 = vmatpush2.msra.mxu1 %v244_v48 }
 0x132   :  { %354 = vmatprep.subr.mxu1 %v1485_v20 }
 0x133   :  { %355 = vmatpush2.msra.mxu1 %v243_v40 }
 0x134   :  { %357 = vmatmul.mubr.f32.vlgmr.msra.gmra.mxu1 %v251_v49  ;;  %1283 = vmatprep.subr.mxu1 %v1674_v19 }
 0x135   :  { %1091 = vmatprep.mubr.msk.f32.mxu1 %vm279_vm0, %v254_v43  ;;  %1284 = vmatpush3.msra.mxu1 %v1674_v19  ;;  %v257_v19 = vld [vmem:[#allocation5 + $0x30] sm:$0xff] }
 0x136   :  { %1285 = vmatprep.subr.mxu1 %v1666_v18 }
 0x137   :  { %1286 = vmatpush3.msra.mxu1 %v1666_v18  ;;  %v1855_v18 = vld [vmem:[%s2053_s3 + $0x8] sm:$0xff] }
 0x138   :  { %362 = vmatmul.mubr.f32.gmra.mxu1 %v253_v45  ;;  %1287 = vmatprep.subr.mxu1 %v1660_v17 }
 0x139   :  { %1092 = vmatprep.mubr.msk.f32.mxu1 %vm279_vm0, %v256_v39  ;;  %1288 = vmatpush3.msra.mxu1 %v1660_v17  ;;  %v472_v17 = vld [vmem:[#allocation7] sm:$0xff] }
 0x13a   :  { %1289 = vmatprep.subr.mxu1 %v1569_v4  ;;  %1273 = vmatprep.subr.mxu0 %v1855_v18 }
 0x13b   :  { %1290 = vmatpush3.msra.mxu1 %v1569_v4  ;;  %1274 = vmatpush3.msra.mxu0 %v1855_v18  ;;  %v1862_v4 = vld [vmem:[%s2053_s3] sm:$0xff] }
 0x13c   :  { %367 = vmatmul.mubr.f32.gmra.mxu1 %v255_v41  ;;  %1297 = vmatprep.subr.mxu1 %v1544_v0 }
 0x13d   :  { %1093 = vmatprep.mubr.msk.f32.mxu1 %vm279_vm0, %v258_v51  ;;  %1275 = vmatprep.subr.mxu0 %v1862_v4 }
 0x13e   :  { %1276 = vmatpush3.msra.mxu0 %v1862_v4 }
 0x13f   :  { %771 = vmatprep.subr.mxu0 %v1485_v20 }
 0x140   :  { %372 = vmatmul.mubr.f32.gmra.mxu1 %v257_v19 }
 0x141   :  { %1291 = vmatprep.mubr.msk.f32.mxu1 %vm279_vm0, %v472_v17 }
 0x144   :  { %1292 = vmatmul.mubr.msk.f32.vlgmr.msra.gmra.mxu1 %vm279_vm0, %v473_v52 }
 0x145   :  { %1298 = vmatpush3.msra.mxu1 %v1544_v0  ;;  %1294 = vmatprep.mubr.msk.f32.mxu1 %vm279_vm0, %v474_v53  ;;  %v476_v0 = vld [vmem:[%s2057_s7] sm:$0xff] }
 0x146   :  { %1299 = vmatprep.subr.mxu1 %v1549_v1 }
 0x147   :  { %1300 = vmatpush3.msra.mxu1 %v1549_v1  ;;  %v1486_v1 = vmov 0  }
 0x148   :  { %1301 = vmatprep.subr.mxu1 %v1556_v2  ;;  %1295 = vmatmul.mubr.msk.f32.gmra.mxu1 %vm279_vm0, %v475_v54 }
 0x149   :  { %1302 = vmatpush3.msra.mxu1 %v1556_v2  ;;  %1396 = vset.pattern.permute.xlu0 %v1486_v1  ;;  %v477_v2 = vld [vmem:[%s2057_s7 + $0x8] sm:$0xff] }
 0x14a   :  { %1303 = vmatprep.subr.mxu1 %v1563_v3  ;;  %1397 = vset.pattern.permute.xlu1 %v1486_v1 }
 0x14b   :  { %1304 = vmatpush3.msra.mxu1 %v1563_v3  ;;  %482 = vperm.xlu0 %1396, %v476_v0   ;;  %v1103_v3 = vld [vmem:[%s2057_s7 + $0x20] sm:$0xff] }
 0x14c   :  { %492 = vperm.xlu1 %1397, %v478_v55   ;;  %1305 = vmatprep.subr.mxu1 %v1575_v5 }
 0x14d   :  { %1306 = vmatpush3.msra.mxu1 %v1575_v5  ;;  %v1105_v5 = vld [vmem:[%s2057_s7 + $0x30] sm:$0xff] }
 0x14e   :  { %1307 = vmatprep.subr.mxu1 %v1583_v6 }
 0x14f   :  { %487 = vperm.xlu0 %1396, %v477_v2   ;;  %1308 = vmatpush3.msra.mxu1 %v1583_v6 }
 0x150   :  { %497 = vperm.xlu1 %1397, %v479_v57   ;;  %1309 = vmatprep.subr.mxu1 %v1590_v7 }
 0x151   :  { %1310 = vmatpush3.msra.mxu1 %v1590_v7 }
 0x152   :  { %1311 = vmatprep.subr.mxu1 %v1597_v8 }
 0x153   :  { %957 = vperm.xlu0 %1396, %v1103_v3   ;;  %1312 = vmatpush3.msra.mxu1 %v1597_v8 }
 0x154   :  { %962 = vperm.xlu1 %1397, %v1104_v58   ;;  %1313 = vmatprep.subr.mxu1 %v1604_v9 }
 0x155   :  { %1314 = vmatpush3.msra.mxu1 %v1604_v9 }
 0x156   :  { %1315 = vmatprep.subr.mxu1 %v1611_v10 }
 0x157   :  { %967 = vperm.xlu0 %1396, %v1105_v5   ;;  %1316 = vmatpush3.msra.mxu1 %v1611_v10 }
 0x158   :  { %972 = vperm.xlu1 %1397, %v1106_v59   ;;  %1317 = vmatprep.subr.mxu1 %v1618_v11 }
 0x159   :  { %1318 = vmatpush3.msra.mxu1 %v1618_v11 }
 0x15a   :  { %1319 = vmatprep.subr.mxu1 %v1625_v12 }
 0x15b   :  { %1320 = vmatpush3.msra.mxu1 %v1625_v12 }
 0x15c   :  { %1321 = vmatprep.subr.mxu1 %v1632_v13 }
 0x15d   :  { %1322 = vmatpush3.msra.mxu1 %v1632_v13 }
 0x15e   :  { %1323 = vmatprep.subr.mxu1 %v1639_v14 }
 0x15f   :  { %1324 = vmatpush3.msra.mxu1 %v1639_v14 }
 0x160   :  { %1325 = vmatprep.subr.mxu1 %v1646_v15 }
 0x161   :  { %1326 = vmatpush3.msra.mxu1 %v1646_v15 }
 0x162   :  { %1327 = vmatprep.subr.mxu1 %v1653_v16 }
 0x163   :  { %1328 = vmatpush3.msra.mxu1 %v1653_v16  ;;  %v1930_v16 = vld [vmem:[%s2054_s4] ss:$0 sm:$0xff] }
 0x164   :  { %1335 = vmatprep.subr.mxu1 %v1682_v22 }
 0x1c6   :  { %v483_v14 = vpop.permute.xlu0 %482 }
 0x1c7   :  { %v493_v36 = vpop.permute.xlu1 %492 }
 0x1ca   :  { %v488_v61 = vpop.permute.xlu0 %487 }
 0x1cb   :  { %v498_v43 = vpop.permute.xlu1 %497 }
 0x1f4   :  { %v358_v6 = vpop.f32.mrf.mxu1 }
 0x1f5   :  { %1277 = vmatprep.mubr.f32.mxu0 %v358_v6  ;;  %v731_v6 = vld [vmem:[#allocation5 + $0x40] sm:$0xff] }
 0x1f6   :  { %v360_v7 = vpop.f32.mrf.mxu1 }
 0x1f7   :  { %v734_v7 = vld [vmem:[#allocation5 + $0x58] sm:$0xff] }
 0x1f8   :  { %v363_v8 = vpop.f32.mrf.mxu1 }
 0x1f9   :  { %1278 = vmatmul.mubr.f32.vlgmr.msra.gmra.mxu0 %v363_v8  ;;  %v733_v8 = vld [vmem:[#allocation5 + $0x50] sm:$0xff] }
 0x1fa   :  { %v365_v9 = vpop.f32.mrf.mxu1 }
 0x1fb   :  { %v736_v9 = vld [vmem:[#allocation5 + $0x68] sm:$0xff] }
 0x1fc   :  { %v368_v10 = vpop.f32.mrf.mxu1 }
 0x1fd   :  { %1280 = vmatprep.mubr.f32.mxu0 %v368_v10  ;;  %v737_v10 = vld [vmem:[#allocation5 + $0x70] sm:$0xff] }
 0x1fe   :  { %v370_v11 = vpop.f32.mrf.mxu1 }
 0x1ff   :  { %v946_v11 = vld [vmem:[#allocation7 + $0x20] sm:$0xff] }
 0x200   :  { %v373_v12 = vpop.f32.mrf.mxu1 }
 0x201   :  { %1281 = vmatmul.mubr.f32.gmra.mxu0 %v373_v12  ;;  %v947_v12 = vld [vmem:[#allocation7 + $0x28] sm:$0xff] }
 0x202   :  { %v375_v13 = vpop.f32.mrf.mxu1 }
 0x203   :  { %v948_v13 = vld [vmem:[#allocation7 + $0x30] sm:$0xff] }
 0x204   :  { %v1293_v15 = vpop.f32.mrf.mxu1 }
 0x205   :  { %v584_v21 = vadd.f32 %v1293_v15, %v488_v61 }
 0x206   :  { %v578_v60 = vpop.f32.mrf.mxu1 }
 0x207   :  { %v579_v44 = vadd.f32 %v578_v60, %v483_v14  ;;  %v949_v14 = vld [vmem:[#allocation7 + $0x38] sm:$0xff] }
 0x208   :  { %v1296_v40 = vpop.f32.mrf.mxu1 }
 0x209   :  { %v594_v45 = vadd.f32 %v1296_v40, %v498_v43 }
 0x20a   :  { %v588_v39 = vpop.f32.mrf.mxu1 }
 0x20b   :  { %v589_v17 = vadd.f32 %v588_v39, %v493_v36 }
 0x2b9   :  { %v1279_v63 = vpop.f32.mrf.mxu0 }
 0x2ba   :  { %v469_v38 = vmul.f32 %v1279_v63, %v1930_v16 }
 0x2bb   :  { %v443_v47 = vpop.f32.mrf.mxu0 }
 0x2bc   :  { %v468_v37 = vmul.f32 %v1930_v16, %v443_v47  ;;  %v598_v48 = vadd.f32 %v584_v21, %v469_v38 }
 0x2be   :  { %v597_v49 = vadd.f32 %v579_v44, %v468_v37  ;;  %v963_v37 = vpop.permute.xlu1 %962 }
 0x2c0   :  { %1398 = vtanh.f32 %v597_v49 }
 0x2c1   :  { %1400 = vtanh.f32 %v598_v48  ;;  %v1282_v41 = vpop.f32.mrf.mxu0 }
 0x2c2   :  { %v471_v51 = vmul.f32 %v1282_v41, %v1930_v16 }
 0x2c3   :  { %v453_v19 = vpop.f32.mrf.mxu0 }
 0x2c4   :  { %v470_v52 = vmul.f32 %v1930_v16, %v453_v19  ;;  %v600_v53 = vadd.f32 %v594_v45, %v471_v51  ;;  %v958_v45 = vpop.permute.xlu0 %957 }
 0x2c6   :  { %v599_v54 = vadd.f32 %v589_v17, %v470_v52 }
 0x2c8   :  { %1402 = vtanh.f32 %v599_v54 }
 0x2c9   :  { %1404 = vtanh.f32 %v600_v53  ;;  %v973_v53 = vpop.permute.xlu1 %972 }
 0x2cd   :  { %v1936_v0 = vpop.eup %1398 }
 0x2ce   :  { %v1938_v55 = vpop.eup %1400  ;;  %1329 = vmatprep.mubr.f32.mxu1 %v1936_v0 }
 0x2cf   :  { %1330 = vmatmul.mubr.f32.vlgmr.msra.gmra.mxu1 %v1938_v55 }
 0x2d0   :  { %1336 = vmatpush3.msra.mxu1 %v1682_v22  ;;  %v732_v22 = vld [vmem:[#allocation5 + $0x48] sm:$0xff] }
 0x2d1   :  { %1337 = vmatprep.subr.mxu1 %v1687_v23  ;;  %1099 = vmatprep.mubr.msk.f32.mxu0 %vm279_vm0, %v732_v22 }
 0x2d2   :  { %1338 = vmatpush3.msra.mxu1 %v1687_v23 }
 0x2d3   :  { %1339 = vmatprep.subr.mxu1 %v1694_v24 }
 0x2d4   :  { %1340 = vmatpush3.msra.mxu1 %v1694_v24 }
 0x2d5   :  { %v1947_v1 = vpop.eup %1402  ;;  %1341 = vmatprep.subr.mxu1 %v1701_v25 }
 0x2d6   :  { %v1950_v2 = vpop.eup %1404  ;;  %1332 = vmatprep.mubr.f32.mxu1 %v1947_v1  ;;  %1342 = vmatpush3.msra.mxu1 %v1701_v25 }
 0x2d7   :  { %1333 = vmatmul.mubr.f32.gmra.mxu1 %v1950_v2  ;;  %1343 = vmatprep.subr.mxu1 %v1708_v26 }
 0x2d8   :  { %1344 = vmatpush3.msra.mxu1 %v1708_v26 }
 0x2d9   :  { %1345 = vmatprep.subr.mxu1 %v1715_v27 }
 0x2da   :  { %1346 = vmatpush3.msra.mxu1 %v1715_v27 }
 0x2db   :  { %1347 = vmatprep.subr.mxu1 %v1722_v28 }
 0x2dc   :  { %1348 = vmatpush3.msra.mxu1 %v1722_v28 }
 0x2dd   :  { %1349 = vmatprep.subr.mxu1 %v1729_v29 }
 0x2de   :  { %1350 = vmatpush3.msra.mxu1 %v1729_v29 }
 0x2df   :  { %1351 = vmatprep.subr.mxu1 %v1736_v30 }
 0x2e0   :  { %1352 = vmatpush3.msra.mxu1 %v1736_v30 }
 0x2e1   :  { %1353 = vmatprep.subr.mxu1 %v1743_v31 }
 0x2e2   :  { %1354 = vmatpush3.msra.mxu1 %v1743_v31 }
 0x2e3   :  { %1355 = vmatprep.subr.mxu1 %v1750_v32 }
 0x2e4   :  { %1356 = vmatpush3.msra.mxu1 %v1750_v32 }
 0x2e5   :  { %1357 = vmatprep.subr.mxu1 %v1757_v33 }
 0x2e6   :  { %1358 = vmatpush3.msra.mxu1 %v1757_v33 }
 0x2e7   :  { %1359 = vmatprep.subr.mxu1 %v1764_v34 }
 0x2e8   :  { %1360 = vmatpush3.msra.mxu1 %v1764_v34 }
 0x2e9   :  { %1361 = vmatprep.subr.mxu1 %v1771_v35 }
 0x2ea   :  { %1362 = vmatpush3.msra.mxu1 %v1771_v35 }
 0x2eb   :  { %1363 = vmatprep.subr.mxu1 %v1855_v18 }
 0x2ec   :  { %1364 = vmatpush3.msra.mxu1 %v1855_v18 }
 0x2ed   :  { %1365 = vmatprep.subr.mxu1 %v1862_v4 }
 0x2ee   :  { %1366 = vmatpush3.msra.mxu1 %v1862_v4 }
 0x38f   :  { %v1331_v23 = vpop.f32.mrf.mxu1 }
 0x390   :  { %v715_v29 = vmul.f32 %v1331_v23, %v1781_v42  ;;  %v707_v33 = vmul.f32 %v1331_v23, %v1791_v50  ;;  %v699_v18 = vmul.f32 %v1331_v23, %v1803_v56  ;;  %v691_v3 = vmul.f32 %v1331_v23, %v1815_v62 }
 0x391   :  { %v671_v24 = vpop.f32.mrf.mxu1  ;;  %v723_v59 = vmul.f32 %v1331_v23, %v1827_v46 }
 0x392   :  { %v714_v30 = vmul.f32 %v671_v24, %v1781_v42  ;;  %v706_v34 = vmul.f32 %v671_v24, %v1791_v50 }
 0x397   :  { %v1334_v25 = vpop.f32.mrf.mxu1 }
 0x398   :  { %v717_v26 = vmul.f32 %v1334_v25, %v1781_v42  ;;  %v709_v31 = vmul.f32 %v1334_v25, %v1791_v50  ;;  %v701_v35 = vmul.f32 %v1334_v25, %v1803_v56  ;;  %v693_v4 = vmul.f32 %v1334_v25, %v1815_v62 }
 0x399   :  { %v681_v27 = vpop.f32.mrf.mxu1  ;;  %v725_v58 = vmul.f32 %v1334_v25, %v1827_v46 }
 0x39a   :  { %772 = vmatpush1.msra.mxu0 %v717_v26  ;;  %v716_v28 = vmul.f32 %v681_v27, %v1781_v42  ;;  %v708_v32 = vmul.f32 %v681_v27, %v1791_v50  ;;  %v700_v42 = vmul.f32 %v681_v27, %v1803_v56  ;;  %v698_v50 = vmul.f32 %v671_v24, %v1803_v56 }
 0x39b   :  { %773 = vmatprep.subr.mxu0 %v1485_v20  ;;  %v692_v57 = vmul.f32 %v681_v27, %v1815_v62  ;;  %v690_v56 = vmul.f32 %v671_v24, %v1815_v62  ;;  %v724_v5 = vmul.f32 %v681_v27, %v1827_v46  ;;  %v722_v62 = vmul.f32 %v671_v24, %v1827_v46  ;;  %v738_v46 = vld [vmem:[#allocation5 + $0x78] sm:$0xff] }
 0x39c   :  { %774 = vmatpush1.msra.mxu0 %v716_v28 }
 0x39d   :  { %775 = vmatprep.subr.mxu0 %v1485_v20 }
 0x39e   :  { %776 = vmatpush1.msra.mxu0 %v715_v29 }
 0x39f   :  { %777 = vmatprep.subr.mxu0 %v1485_v20 }
 0x3a0   :  { %778 = vmatpush1.msra.mxu0 %v714_v30 }
 0x3a1   :  { %779 = vmatprep.subr.mxu0 %v1485_v20 }
 0x3a2   :  { %780 = vmatpush1.msra.mxu0 %v709_v31 }
 0x3a3   :  { %781 = vmatprep.subr.mxu0 %v1485_v20 }
 0x3a4   :  { %782 = vmatpush1.msra.mxu0 %v708_v32 }
 0x3a5   :  { %783 = vmatprep.subr.mxu0 %v1485_v20 }
 0x3a6   :  { %784 = vmatpush1.msra.mxu0 %v707_v33 }
 0x3a7   :  { %785 = vmatprep.subr.mxu0 %v1485_v20 }
 0x3a8   :  { %786 = vmatpush1.msra.mxu0 %v706_v34 }
 0x3a9   :  { %787 = vmatprep.subr.mxu0 %v1485_v20 }
 0x3aa   :  { %788 = vmatpush1.msra.mxu0 %v701_v35 }
 0x3ab   :  { %789 = vmatprep.subr.mxu0 %v1485_v20 }
 0x3ac   :  { %790 = vmatpush1.msra.mxu0 %v700_v42 }
 0x3ad   :  { %791 = vmatprep.subr.mxu0 %v1485_v20 }
 0x3ae   :  { %792 = vmatpush1.msra.mxu0 %v699_v18 }
 0x3af   :  { %793 = vmatprep.subr.mxu0 %v1485_v20 }
 0x3b0   :  { %794 = vmatpush1.msra.mxu0 %v698_v50 }
 0x3b1   :  { %795 = vmatprep.subr.mxu0 %v1485_v20 }
 0x3b2   :  { %796 = vmatpush1.msra.mxu0 %v693_v4 }
 0x3b3   :  { %797 = vmatprep.subr.mxu0 %v1485_v20 }
 0x3b4   :  { %798 = vmatpush1.msra.mxu0 %v692_v57 }
 0x3b5   :  { %799 = vmatprep.subr.mxu0 %v1485_v20 }
 0x3b6   :  { %800 = vmatpush1.msra.mxu0 %v691_v3 }
 0x3b7   :  { %801 = vmatprep.subr.mxu0 %v1485_v20 }
 0x3b8   :  { %802 = vmatpush1.msra.mxu0 %v690_v56 }
 0x3b9   :  { %827 = vmatprep.subr.mxu0 %v1485_v20 }
 0x3ba   :  { %828 = vmatpush2.msra.mxu0 %v725_v58 }
 0x3bb   :  { %829 = vmatprep.subr.mxu0 %v1485_v20 }
 0x3bc   :  { %830 = vmatpush2.msra.mxu0 %v724_v5 }
 0x3bd   :  { %831 = vmatprep.subr.mxu0 %v1485_v20 }
 0x3be   :  { %832 = vmatpush2.msra.mxu0 %v723_v59 }
 0x3bf   :  { %833 = vmatprep.subr.mxu0 %v1485_v20  ;;  %v735_v20 = vld [vmem:[#allocation5 + $0x60] sm:$0xff] }
 0x3c0   :  { %834 = vmatpush2.msra.mxu0 %v722_v62 }
 0x3c1   :  { %836 = vmatmul.mubr.f32.vlgmr.msra.gmra.mxu0 %v731_v6  ;;  %1373 = vmatprep.subr.mxu0 %v1950_v2 }
 0x3c2   :  { %1374 = vmatpush3.msra.mxu0 %v1950_v2  ;;  %1100 = vmatprep.mubr.msk.f32.mxu0 %vm279_vm0, %v734_v7  ;;  %v968_v2 = vpop.permute.xlu0 %967 }
 0x3c3   :  { %1375 = vmatprep.subr.mxu0 %v1947_v1 }
 0x3c4   :  { %1376 = vmatpush3.msra.mxu0 %v1947_v1 }
 0x3c5   :  { %841 = vmatmul.mubr.f32.gmra.mxu0 %v733_v8  ;;  %1377 = vmatprep.subr.mxu0 %v1938_v55 }
 0x3c6   :  { %1378 = vmatpush3.msra.mxu0 %v1938_v55  ;;  %1101 = vmatprep.mubr.msk.f32.mxu0 %vm279_vm0, %v736_v9 }
 0x3c7   :  { %1379 = vmatprep.subr.mxu0 %v1936_v0 }
 0x3c8   :  { %1380 = vmatpush3.msra.mxu0 %v1936_v0 }
 0x3c9   :  { %846 = vmatmul.mubr.f32.gmra.mxu0 %v735_v20 }
 0x3ca   :  { %1102 = vmatprep.mubr.msk.f32.mxu0 %vm279_vm0, %v738_v46 }
 0x3cd   :  { %851 = vmatmul.mubr.f32.gmra.mxu0 %v737_v10 }
 0x3ce   :  { %1381 = vmatprep.mubr.msk.f32.mxu0 %vm279_vm0, %v946_v11 }
 0x3d1   :  { %1382 = vmatmul.mubr.msk.f32.vlgmr.msra.gmra.mxu0 %vm279_vm0, %v947_v12 }
 0x3d2   :  { %1384 = vmatprep.mubr.msk.f32.mxu0 %vm279_vm0, %v948_v13 }
 0x3d5   :  { %1385 = vmatmul.mubr.msk.f32.gmra.mxu0 %vm279_vm0, %v949_v14 }
 0x481   :  { %v837_v15 = vpop.f32.mrf.mxu0 }
 0x482   :  { %1367 = vmatprep.mubr.f32.mxu1 %v837_v15 }
 0x483   :  { %v839_v60 = vpop.f32.mrf.mxu0 }
 0x485   :  { %v842_v61 = vpop.f32.mrf.mxu0 }
 0x486   :  { %1368 = vmatmul.mubr.f32.vlgmr.msra.gmra.mxu1 %v842_v61 }
 0x487   :  { %v844_v63 = vpop.f32.mrf.mxu0 }
 0x489   :  { %v847_v21 = vpop.f32.mrf.mxu0 }
 0x48a   :  { %1370 = vmatprep.mubr.f32.mxu1 %v847_v21 }
 0x48b   :  { %v849_v36 = vpop.f32.mrf.mxu0 }
 0x48d   :  { %v852_v38 = vpop.f32.mrf.mxu0 }
 0x48e   :  { %1371 = vmatmul.mubr.f32.gmra.mxu1 %v852_v38 }
 0x48f   :  { %v854_v44 = vpop.f32.mrf.mxu0 }
 0x491   :  { %v1383_v47 = vpop.f32.mrf.mxu0 }
 0x492   :  { %v1059_v49 = vadd.f32 %v1383_v47, %v963_v37 }
 0x493   :  { %v1053_v48 = vpop.f32.mrf.mxu0 }
 0x494   :  { %v1054_v41 = vadd.f32 %v1053_v48, %v958_v45 }
 0x495   :  { %v1386_v17 = vpop.f32.mrf.mxu0 }
 0x496   :  { %v1069_v55 = vadd.f32 %v1386_v17, %v973_v53 }
 0x497   :  { %v1063_v54 = vpop.f32.mrf.mxu0 }
 0x498   :  { %v1064_v23 = vadd.f32 %v1063_v54, %v968_v2 }
 0x546   :  { %v1369_v40 = vpop.f32.mrf.mxu1 }
 0x547   :  { %v942_v43 = vmul.f32 %v1369_v40, %v1930_v16 }
 0x548   :  { %v922_v39 = vpop.f32.mrf.mxu1 }
 0x549   :  { %v1073_v51 = vadd.f32 %v1059_v49, %v942_v43  ;;  %v941_v19 = vmul.f32 %v1930_v16, %v922_v39 }
 0x54b   :  { %1406 = vtanh.f32 %v1073_v51  ;;  %v1072_v52 = vadd.f32 %v1054_v41, %v941_v19 }
 0x54d   :  { %1408 = vtanh.f32 %v1072_v52 }
 0x54e   :  { %v1372_v0 = vpop.f32.mrf.mxu1 }
 0x54f   :  { %v944_v1 = vmul.f32 %v1372_v0, %v1930_v16 }
 0x550   :  { %v932_v22 = vpop.f32.mrf.mxu1 }
 0x551   :  { %v1075_v24 = vadd.f32 %v1069_v55, %v944_v1  ;;  %v943_v25 = vmul.f32 %v1930_v16, %v932_v22 }
 0x553   :  { %1410 = vtanh.f32 %v1075_v24  ;;  %v1074_v26 = vadd.f32 %v1064_v23, %v943_v25 }
 0x555   :  { %1412 = vtanh.f32 %v1074_v26 }
 0x558   :  { %v1407_v27 = vpop.eup %1406 }
 0x559   :  { %1081 = vst [vmem:[%s2058_s8 + $0x8] sm:$0xff] %v1407_v27 }
 0x55a   :  { %v1409_v28 = vpop.eup %1408 }
 0x55b   :  { %1080 = vst [vmem:[%s2058_s8] sm:$0xff] %v1409_v28 }
 0x560   :  { %v1411_v29 = vpop.eup %1410 }
 0x561   :  { %1083 = vst [vmem:[%s2058_s8 + $0x18] sm:$0xff] %v1411_v29 }
 0x562   :  { %v1413_v30 = vpop.eup %1412 }
 0x563   :  { %1082 = vst [vmem:[%s2058_s8 + $0x10] sm:$0xff] %v1413_v30 }
 0x564   :  { %1088 = vsyncpa [#allocation4], 1 }
 0x565   :  { %1089 = vsyncpa [#allocation6], 1 }

</bundles_post_ra>
